<compile_context>
chip_gen: v5e
topology: v5e:2x2
jax: 0.10.0
libtpu: 0.0.40
codegen_flags: <defaults>
</compile_context>

<pallas_src>
import functools

import jax
import jax.numpy as jnp
import numpy as np
from jax.experimental import pallas as pl
from jax.experimental.pallas import tpu as pltpu


def _round_up(v, m):
    return ((v + m - 1) // m) * m


def _mean_conv1x1_kernel(x_ref, w_ref, b_ref, o_ref, acc_ref, *, inv_hw):
    # x_ref: [TB, TC, HW]  w_ref: [TC, OC]  b_ref: [1, OC]
    # o_ref: [TB, OC]      acc_ref: [TB, OC] f32 scratch (lives across c steps)
    c = pl.program_id(1)

    @pl.when(c == 0)
    def _init():
        acc_ref[...] = jnp.zeros_like(acc_ref)

    # Global-average pool: reduce the spatial (lane) axis, accumulating in f32
    # without materialising a widened copy of the whole tile.
    s = jnp.sum(x_ref[...], axis=-1, dtype=jnp.float32)                  # [TB, TC]

    # 1x1 conv on the pooled vector == matmul contracting C.  Weight was
    # pre-transposed to [C, OC] in the wrapper -> MXU-friendly [K, N] RHS,
    # no per-step XLU transpose of the resident weight.
    acc_ref[...] += jnp.dot(s, w_ref[...].astype(jnp.float32),
                            preferred_element_type=jnp.float32)          # [TB, OC]

    @pl.when(c == pl.num_programs(1) - 1)
    def _finalize():
        # Fold the 1/HW mean scale onto the tiny [TB, OC] output (one vreg of
        # VPU work) instead of scaling the large activation tile.
        o_ref[...] = (acc_ref[...] * inv_hw
                      + b_ref[...].astype(jnp.float32)).astype(o_ref.dtype)


def _pick_c_chunk(C):
    """Split the channel (reduction) axis into 2-4 equal chunks (multiples of 8)
    so a single-batch-step call still pipelines DMA against compute.  The chunk
    MUST divide C exactly: a ragged reduction block would feed garbage channels
    into the accumulator."""
    for nb in (4, 3, 2):
        tc = C // nb
        if C % nb == 0 and tc % 8 == 0:
            return tc
    return C


def mean_conv2d(x_nchw, weight_oc_ic, bias_oc):
    """PyTorch semantics: x.mean((2,3), keepdim=True) -> Conv2d(C, OC, 1x1).
    x_nchw: [N, C, H, W]; weight: [OC, C] (1x1 kernel squeezed); bias: [OC].
    Returns [N, OC, 1, 1]."""
    N, C, H, W = x_nchw.shape
    OC = weight_oc_ic.shape[0]
    HW = H * W

    x_itemsize = jnp.dtype(x_nchw.dtype).itemsize
    w_itemsize = jnp.dtype(weight_oc_ic.dtype).itemsize

    # ---- generation-aware VMEM budget --------------------------------------
    try:
        phys_vmem = int(pltpu.get_tpu_info().vmem_capacity_bytes)
    except Exception:                       # conservative fallback: v7x per-TC
        phys_vmem = 64 * 1024 * 1024
    # Headroom for compiler-internal scratch; never request more than 64 MiB
    # scoped (48 MiB on v7x's 64-MiB parts), never less than 32 MiB budget.
    scoped_budget = max(min(phys_vmem - (16 << 20), 64 << 20), 32 << 20)

    hw_pad = _round_up(HW, 128)             # x tile pads HW to 128 lanes in VMEM
    oc_pad = _round_up(OC, 128)
    c_pad8 = _round_up(C, 8)
    per_row_bytes = c_pad8 * hw_pad * x_itemsize      # one batch row of x in VMEM
    w_resident = 2 * c_pad8 * oc_pad * w_itemsize     # double-buffered resident W
    slack = 1 << 20

    # ---- batch tile ---------------------------------------------------------
    # The output block's sublane dim (TB) must be a multiple of 8 or equal N.
    if N <= 8:
        TB = N
    else:
        tb_budget = max(
            8,
            ((scoped_budget - w_resident - slack) // max(1, 2 * per_row_bytes))
            // 8 * 8,
        )
        TB = int(min(16, tb_budget))
        if TB >= N:                          # keep >= 2 batch steps (megacore /
            TB = 8                           # pipelining); last block is ragged.
    n_blocks = pl.cdiv(N, TB)

    # ---- channel (reduction) tile -------------------------------------------
    # Single batch step (e.g. the module's N=1): chunk C so x/weight DMAs
    # pipeline against compute.  Multiple batch steps: keep the whole weight
    # resident (TC == C, constant index_map) so it is fetched from HBM once.
    if n_blocks == 1 and C >= 512:
        TC = _pick_c_chunk(C)
    else:
        TC = C
    c_blocks = C // TC

    # ---- VMEM limit: always set (v5e's default scoped limit is only 16 MiB) --
    x_buf = TB * _round_up(TC, 8) * hw_pad * x_itemsize
    w_buf = _round_up(TC, 8) * oc_pad * w_itemsize
    vmem_est = 2 * x_buf + 2 * w_buf + slack
    vmem_limit = int(min(scoped_budget, max(vmem_est + (2 << 20), 16 << 20)))

    # ---- zero-copy / one-time glue -------------------------------------------
    x_flat = x_nchw.reshape(N, C, HW)        # NCHW -> [N, C, HW] (bitcast reshape)
    w_cxoc = jnp.transpose(weight_oc_ic)     # one-time [C, OC]; MXU-friendly RHS
    b_2d = bias_oc.reshape(1, OC)

    cost = pl.CostEstimate(
        flops=2 * N * C * OC + N * C * HW,
        transcendentals=0,
        bytes_accessed=(N * C * HW * x_itemsize + C * OC * w_itemsize
                        + OC * w_itemsize + N * OC * x_itemsize),
    )

    # Note: weight/bias use constant (per-c) index maps; requesting single
    # buffering (pl.Buffered(1)) would reclaim ~1 MiB more VMEM but is skipped
    # for lowering robustness — the budget above already accounts for 2 buffers.
    out = pl.pallas_call(
        functools.partial(_mean_conv1x1_kernel, inv_hw=1.0 / HW),
        out_shape=jax.ShapeDtypeStruct((N, OC), x_nchw.dtype),
        grid_spec=pltpu.PrefetchScalarGridSpec(
            num_scalar_prefetch=0,
            grid=(n_blocks, c_blocks),
            in_specs=[
                pl.BlockSpec((TB, TC, HW), lambda n, c: (n, c, 0)),
                pl.BlockSpec((TC, OC), lambda n, c: (c, 0)),
                pl.BlockSpec((1, OC), lambda n, c: (0, 0)),
            ],
            out_specs=pl.BlockSpec((TB, OC), lambda n, c: (n, 0)),
            scratch_shapes=[pltpu.VMEM((TB, OC), jnp.float32)],
        ),
        compiler_params=pltpu.CompilerParams(
            dimension_semantics=("parallel", "arbitrary"),
            vmem_limit_bytes=vmem_limit,
        ),
        cost_estimate=cost,
    )(x_flat, w_cxoc, b_2d)

    return out.reshape(N, OC, 1, 1)


def _reference(x, weight, bias):
    pooled = jnp.mean(x, axis=(2, 3), keepdims=True)                # [N, C, 1, 1]
    return jnp.einsum("nchw,oc->nohw", pooled, weight) + bias[None, :, None, None]


def _run_case(key, N, C, H, W, OC):
    kx, kw, kb = jax.random.split(key, 3)
    x = jax.random.normal(kx, (N, C, H, W), dtype=jnp.float32)
    bound = 1.0 / np.sqrt(C)                 # PyTorch-like Conv2d init bounds
    weight = jax.random.uniform(kw, (OC, C), dtype=jnp.float32,
                                minval=-bound, maxval=bound)
    bias = jax.random.uniform(kb, (OC,), dtype=jnp.float32,
                              minval=-bound, maxval=bound)

    out = jax.block_until_ready(mean_conv2d(x, weight, bias))
    ref = _reference(x, weight, bias)
    np.testing.assert_allclose(np.asarray(out), np.asarray(ref),
                               rtol=1e-4, atol=1e-4)
    assert out.shape == (N, OC, 1, 1)
    return out


if __name__ == "__main__":
    key = jax.random.PRNGKey(0)
    k1, k2 = jax.random.split(key)

    # Module's actual shape: x [1, 2304, 7, 7], Conv2d(2304 -> 96, 1x1).
    # (N=1 -> single batch step -> exercises the C-chunked / accumulator path.)
    _run_case(k1, N=1, C=2304, H=7, W=7, OC=96)

    # Ragged-batch path: N > 8 and not a multiple of the batch tile.
    _run_case(k2, N=13, C=256, H=5, W=5, OC=64)

    print("KERNEL_OK")
</pallas_src>

<mosaic_0001>
module attributes {stable_mosaic.version = 11 : i64} {
  func.func @_mean_conv1x1_kernel(%arg0: i32, %arg1: i32, %arg2: memref<1x576x49xf32, #tpu.memory_space<vmem>>, %arg3: memref<576x96xf32, #tpu.memory_space<vmem>>, %arg4: memref<1x96xf32, #tpu.memory_space<vmem>>, %arg5: memref<1x96xf32, #tpu.memory_space<vmem>>, %arg6: memref<1x96xf32, #tpu.memory_space<vmem>>) attributes {dimension_semantics = [#tpu.dimension_semantics<parallel>, #tpu.dimension_semantics<arbitrary>], iteration_bounds = array<i64: 1, 4>, scalar_prefetch = 0 : i64, scratch_operands = 1 : i64, tpu.core_type = #tpu.core_type<tc>, window_params = [{transform_indices = @transform_0, window_bounds = array<i64: 1, 576, 49>}, {transform_indices = @transform_1, window_bounds = array<i64: 576, 96>}, {pipeline_mode = #tpu.pipeline_mode<synchronous>, transform_indices = @transform_2, window_bounds = array<i64: 1, 96>}, {transform_indices = @transform_3, window_bounds = array<i64: 1, 96>}]} {
    %c0_i32 = arith.constant 0 : i32
    %0 = arith.cmpi eq, %arg1, %c0_i32 : i32
    %1 = arith.extui %0 : i1 to i32
    %c0_i32_0 = arith.constant 0 : i32
    %2 = arith.cmpi ne, %1, %c0_i32_0 : i32
    scf.if %2 {
      %cst_11 = arith.constant 0.000000e+00 : f32
      %13 = vector.broadcast %cst_11 : f32 to vector<1x96xf32>
      %c0_12 = arith.constant 0 : index
      %c0_13 = arith.constant 0 : index
      %14 = vector.load %arg6[%c0_12, %c0_13] : memref<1x96xf32, #tpu.memory_space<vmem>>, vector<1x96xf32>
      tpu.vector_store %arg6[%c0_12, %c0_13], %13 {strides = array<i32>} : memref<1x96xf32, #tpu.memory_space<vmem>>, vector<1x96xf32>,
    } else {
    }
    %c0 = arith.constant 0 : index
    %c0_1 = arith.constant 0 : index
    %c0_2 = arith.constant 0 : index
    %3 = vector.load %arg2[%c0, %c0_1, %c0_2] : memref<1x576x49xf32, #tpu.memory_space<vmem>>, vector<1x576x49xf32>
    %cst = arith.constant dense<0.000000e+00> : vector<1x576xf32>
    %4 = vector.multi_reduction <add>, %3, %cst [2] : vector<1x576x49xf32> to vector<1x576xf32>
    %c0_3 = arith.constant 0 : index
    %c0_4 = arith.constant 0 : index
    %5 = vector.load %arg6[%c0_3, %c0_4] : memref<1x96xf32, #tpu.memory_space<vmem>>, vector<1x96xf32>
    %c0_5 = arith.constant 0 : index
    %c0_6 = arith.constant 0 : index
    %6 = vector.load %arg3[%c0_5, %c0_6] : memref<576x96xf32, #tpu.memory_space<vmem>>, vector<576x96xf32>
    %cst_7 = arith.constant dense<0.000000e+00> : vector<1x96xf32>
    %7 = tpu.matmul %4, %6, %cst_7 {dimension_numbers = #tpu.dot_dimension_numbers<[1], [0], [0], [1], [0, 0, 1, 1], [], []>} : vector<1x576xf32>, vector<576x96xf32>, vector<1x96xf32> -> vector<1x96xf32>
    %8 = arith.addf %5, %7 : vector<1x96xf32>
    %c0_8 = arith.constant 0 : index
    %c0_9 = arith.constant 0 : index
    %9 = vector.load %arg6[%c0_8, %c0_9] : memref<1x96xf32, #tpu.memory_space<vmem>>, vector<1x96xf32>
    tpu.vector_store %arg6[%c0_8, %c0_9], %8 {strides = array<i32>} : memref<1x96xf32, #tpu.memory_space<vmem>>, vector<1x96xf32>,
    %c3_i32 = arith.constant 3 : i32
    %10 = arith.cmpi eq, %arg1, %c3_i32 : i32
    %11 = arith.extui %10 : i1 to i32
    %c0_i32_10 = arith.constant 0 : i32
    %12 = arith.cmpi ne, %11, %c0_i32_10 : i32
    scf.if %12 {
      %c0_11 = arith.constant 0 : index
      %c0_12 = arith.constant 0 : index
      %13 = vector.load %arg6[%c0_11, %c0_12] : memref<1x96xf32, #tpu.memory_space<vmem>>, vector<1x96xf32>
      %cst_13 = arith.constant 0.0204081628 : f32
      %14 = vector.broadcast %cst_13 : f32 to vector<1x96xf32>
      %15 = arith.mulf %13, %14 : vector<1x96xf32>
      %c0_14 = arith.constant 0 : index
      %c0_15 = arith.constant 0 : index
      %16 = vector.load %arg4[%c0_14, %c0_15] : memref<1x96xf32, #tpu.memory_space<vmem>>, vector<1x96xf32>
      %17 = arith.addf %15, %16 : vector<1x96xf32>
      %c0_16 = arith.constant 0 : index
      %c0_17 = arith.constant 0 : index
      %18 = vector.load %arg5[%c0_16, %c0_17] : memref<1x96xf32, #tpu.memory_space<vmem>>, vector<1x96xf32>
      tpu.vector_store %arg5[%c0_16, %c0_17], %17 {strides = array<i32>} : memref<1x96xf32, #tpu.memory_space<vmem>>, vector<1x96xf32>,
    } else {
    }
    return
  }
  func.func @transform_0(%arg0: i32, %arg1: i32) -> (i32, i32, i32) {
    %c0_i32 = arith.constant 0 : i32
    %c0_i32_0 = arith.constant 0 : i32
    return %arg0, %arg1, %c0_i32 : i32, i32, i32
  }
  func.func @transform_1(%arg0: i32, %arg1: i32) -> (i32, i32) {
    %c0_i32 = arith.constant 0 : i32
    %c0_i32_0 = arith.constant 0 : i32
    return %arg1, %c0_i32 : i32, i32
  }
  func.func @transform_2(%arg0: i32, %arg1: i32) -> (i32, i32) {
    %c0_i32 = arith.constant 0 : i32
    %c0_i32_0 = arith.constant 0 : i32
    %c0_i32_1 = arith.constant 0 : i32
    return %c0_i32, %c0_i32_0 : i32, i32
  }
  func.func @transform_3(%arg0: i32, %arg1: i32) -> (i32, i32) {
    %c0_i32 = arith.constant 0 : i32
    %c0_i32_0 = arith.constant 0 : i32
    return %arg0, %c0_i32 : i32, i32
  }
}

</mosaic_0001>

<bundles_post_ra>
// kernel: tpu_custom_call.1
= control target key start
LH: loop header
LB: loop body
LE: loop exit
PB: predicated region body
PF: predicated region fallthrough
CT: control target
= control target key end

     0   :  { %8 = vsyncpa [#allocation4], 0  ;;  %s1142_s12 = smov 0   ;;  %s1144_s13 = smov 0   ;;  %s1664_s0 = inlined_call_operand.vmem [shape: f32[1,2304,49], index: 0, kind: input, shape index: {}]   ;;  %s1665_s1 = inlined_call_operand.vmem [shape: f32[2304,96], index: 1, kind: input, shape index: {}]   ;;  %s1666_s2 = inlined_call_operand.vmem [shape: f32[1,96], index: 2, kind: input, shape index: {}]   ;;  %s1667_s3 = inlined_call_operand.hbm [shape: f32[1,96], index: 3, kind: output, shape index: {}]  }
   0x1   :  { %s1146_s14 = smov 0  }
   0x2 LB: > { %s1019_s15 = sadd.s32 4294967295, %s1118_s14   ;;  %s23_s16 = sadd.s32 1, %s1114_s13  ;;  %s1118_s14 = sphi %s1146_s14, %s14_s14   ;;  %s1114_s13 = sphi %s1144_s13, %s1669_s13   ;;  %s1110_s12 = sphi %s1142_s12, %s1668_s12  }
   0x3   : > { %p24_p0 = scmp.ge.s32.totalorder %s23_s16, 4  ;;  %p1022_p1 = scmp.ge.s32.totalorder %s1118_s14, 1 }
   0x4   : > { %p168_p2 = scmp.lt.s32.totalorder %s1118_s14, 5 }
   0x5   : > { %s1671_s16 = smov (%p24_p0, %s23_s16), 0 }
   0x6   : > { %p169_p3 = pnand %p1022_p1, %p168_p2 }
   0x7   : > { %s196_s17 = smul.u32 (!%p169_p3), 72, %s1110_s12  ;;  %p1025_p5 = scmp.ne.s32.totalorder (!%p169_p3), %s1110_s12, 0 }
   0x8   : > { %172 = sbr.rel (%p169_p3) target bundleno = 477 (0x1dd), region = 32 }
   0x9   : > { %p199_p4 = scmp.lt.s32.totalorder (!%p169_p3), %s196_s17, 287 }
   0xd   : > { %s1673_s17 = smov (!%p199_p4, %s196_s17), 287  ;;  %215 = sbr.rel (%p1025_p5) target bundleno = 20 (0x14), region = 36 }
   0xe   : > { %s1023_s18 = sshll.u32 %s1673_s17, 3 }
   0xf   : > { %s1167_s21 = scalar_lea.vmem %s1664_s0, %s1023_s18  ;;  %s1172_s24 = scalar_lea.vmem %s1665_s1, %s1023_s18 }
  0x12   : > { %vm216_vm0 = vcmask 778240   ;;  %v1120_v0 = vmov 0.0  }
  0x13   : > { %217 = vst.msk [vmem:[#allocation2] sm:$0x1] %vm216_vm0, %v1120_v0 }
  0x14 PF: > { %v222_v1 = vld [vmem:[%s1167_s21 + $0x20] sm:$0xff]  ;;  %vm290_vm1 = vcmask 400384   ;;  %v220_v2 = vld [vmem:[%s1167_s21 + $0x10] sm:$0xff]  ;;  %v223_v7 = vld [vmem:[%s1167_s21 + $0x28] sm:$0xff]  ;;  %vm657_vm2 = vcmask 130112   ;;  %vm661_vm3 = vcmask 195712  }
  0x15   : > { %v218_v3 = vld [vmem:[%s1167_s21] sm:$0xff]  ;;  %v303_v4 = vsel %vm290_vm1, %v222_v1, 0.0  ;;  %v297_v5 = vsel %vm290_vm1, %v220_v2, 0.0  ;;  %v221_v8 = vld [vmem:[%s1167_s21 + $0x18] sm:$0xff]  ;;  %v219_v9 = vld [vmem:[%s1167_s21 + $0x8] sm:$0xff]  ;;  %v306_v10 = vsel %vm290_vm1, %v223_v7, 0.0 }
  0x16   : > { %v291_v6 = vsel %vm290_vm1, %v218_v3, 0.0  ;;  %304 = vadd.xlane.f32.xlu2 %v303_v4  ;;  %298 = vadd.xlane.f32.xlu1 %v297_v5  ;;  %v300_v11 = vsel %vm290_vm1, %v221_v8, 0.0  ;;  %v294_v12 = vsel %vm290_vm1, %v219_v9, 0.0  ;;  %v251_v13 = vld [vmem:[%s1167_s21 + $0x108] sm:$0xff]  ;;  %v250_v14 = vld [vmem:[%s1167_s21 + $0x100] sm:$0xff]  ;;  %v224_v15 = vld [vmem:[%s1167_s21 + $0x30] sm:$0xff] }
  0x17   : > { %292 = vadd.xlane.f32.xlu0 %v291_v6  ;;  %v390_v16 = vsel %vm290_vm1, %v251_v13, 0.0  ;;  %v387_v17 = vsel %vm290_vm1, %v250_v14, 0.0  ;;  %v309_v18 = vsel %vm290_vm1, %v224_v15, 0.0  ;;  %v266_v19 = vld [vmem:[%s1167_s21 + $0x180] sm:$0xff]  ;;  %v253_v20 = vld [vmem:[%s1167_s21 + $0x118] sm:$0xff]  ;;  %v252_v21 = vld [vmem:[%s1167_s21 + $0x110] sm:$0xff] }
  0x18   : > { %v435_v22 = vsel %vm290_vm1, %v266_v19, 0.0  ;;  %v396_v23 = vsel %vm290_vm1, %v253_v20, 0.0  ;;  %v393_v24 = vsel %vm290_vm1, %v252_v21, 0.0  ;;  %v268_v25 = vld [vmem:[%s1167_s21 + $0x190] sm:$0xff]  ;;  %v254_v26 = vld [vmem:[%s1167_s21 + $0x120] sm:$0xff]  ;;  %v267_v27 = vld [vmem:[%s1167_s21 + $0x188] sm:$0xff] }
  0x19   : > { %v441_v28 = vsel %vm290_vm1, %v268_v25, 0.0  ;;  %v399_v29 = vsel %vm290_vm1, %v254_v26, 0.0  ;;  %v438_v30 = vsel %vm290_vm1, %v267_v27, 0.0  ;;  %v255_v31 = vld [vmem:[%s1167_s21 + $0x128] sm:$0xff]  ;;  %v234_v33 = vld [vmem:[%s1167_s21 + $0x80] sm:$0xff]  ;;  %v256_v37 = vld [vmem:[%s1167_s21 + $0x130] sm:$0xff]  ;;  %v652_v27 = vlaneseq }
  0x1a   : > { %v235_v32 = vld [vmem:[%s1167_s21 + $0x88] sm:$0xff]  ;;  %v402_v34 = vsel %vm290_vm1, %v255_v31, 0.0  ;;  %v339_v36 = vsel %vm290_vm1, %v234_v33, 0.0  ;;  %v236_v38 = vld [vmem:[%s1167_s21 + $0x90] sm:$0xff]  ;;  %v269_v39 = vld [vmem:[%s1167_s21 + $0x198] sm:$0xff]  ;;  %v405_v40 = vsel %vm290_vm1, %v256_v37, 0.0 }
  0x1b   : > { %v342_v35 = vsel %vm290_vm1, %v235_v32, 0.0  ;;  %v345_v41 = vsel %vm290_vm1, %v236_v38, 0.0  ;;  %v444_v42 = vsel %vm290_vm1, %v269_v39, 0.0  ;;  %v257_v43 = vld [vmem:[%s1167_s21 + $0x138] sm:$0xff]  ;;  %v270_v45 = vld [vmem:[%s1167_s21 + $0x1a0] sm:$0xff]  ;;  %v271_v51 = vld [vmem:[%s1167_s21 + $0x1a8] sm:$0xff] }
  0x1c   : > { %v237_v44 = vld [vmem:[%s1167_s21 + $0x98] sm:$0xff]  ;;  %v408_v46 = vsel %vm290_vm1, %v257_v43, 0.0  ;;  %v447_v48 = vsel %vm290_vm1, %v270_v45, 0.0  ;;  %v258_v49 = vld [vmem:[%s1167_s21 + $0x140] sm:$0xff]  ;;  %v450_v54 = vsel %vm290_vm1, %v271_v51, 0.0  ;;  %v239_v55 = vld [vmem:[%s1167_s21 + $0xa8] sm:$0xff] }
  0x1d   : > { %v348_v47 = vsel %vm290_vm1, %v237_v44, 0.0  ;;  %v238_v50 = vld [vmem:[%s1167_s21 + $0xa0] sm:$0xff]  ;;  %v411_v52 = vsel %vm290_vm1, %v258_v49, 0.0  ;;  %v225_v56 = vld [vmem:[%s1167_s21 + $0x38] sm:$0xff]  ;;  %v272_v57 = vld [vmem:[%s1167_s21 + $0x1b0] sm:$0xff]  ;;  %v354_v58 = vsel %vm290_vm1, %v239_v55, 0.0 }
  0x1e   : > { %307 = vadd.xlane.f32.xlu2 %v306_v10  ;;  %301 = vadd.xlane.f32.xlu1 %v300_v11  ;;  %v351_v53 = vsel %vm290_vm1, %v238_v50, 0.0  ;;  %v312_v59 = vsel %vm290_vm1, %v225_v56, 0.0  ;;  %v453_v60 = vsel %vm290_vm1, %v272_v57, 0.0  ;;  %v226_v61 = vld [vmem:[%s1167_s21 + $0x40] sm:$0xff]  ;;  %v273_v62 = vld [vmem:[%s1167_s21 + $0x1b8] sm:$0xff]  ;;  %v259_v63 = vld [vmem:[%s1167_s21 + $0x148] sm:$0xff] }
  0x1f   : > { %295 = vadd.xlane.f32.xlu0 %v294_v12  ;;  %v315_v0 = vsel %vm290_vm1, %v226_v61, 0.0  ;;  %v456_v1 = vsel %vm290_vm1, %v273_v62, 0.0  ;;  %v414_v2 = vsel %vm290_vm1, %v259_v63, 0.0  ;;  %v274_v3 = vld [vmem:[%s1167_s21 + $0x1c0] sm:$0xff]  ;;  %v260_v4 = vld [vmem:[%s1167_s21 + $0x150] sm:$0xff]  ;;  %v261_v9 = vld [vmem:[%s1167_s21 + $0x158] sm:$0xff] }
  0x20   : > { %v240_v5 = vld [vmem:[%s1167_s21 + $0xb0] sm:$0xff]  ;;  %v459_v6 = vsel %vm290_vm1, %v274_v3, 0.0  ;;  %v417_v7 = vsel %vm290_vm1, %v260_v4, 0.0  ;;  %v241_v10 = vld [vmem:[%s1167_s21 + $0xb8] sm:$0xff]  ;;  %v227_v11 = vld [vmem:[%s1167_s21 + $0x48] sm:$0xff]  ;;  %v420_v12 = vsel %vm290_vm1, %v261_v9, 0.0 }
  0x21   : > { %v357_v8 = vsel %vm290_vm1, %v240_v5, 0.0  ;;  %v360_v13 = vsel %vm290_vm1, %v241_v10, 0.0  ;;  %v318_v14 = vsel %vm290_vm1, %v227_v11, 0.0  ;;  %v242_v15 = vld [vmem:[%s1167_s21 + $0xc0] sm:$0xff]  ;;  %v229_v21 = vld [vmem:[%s1167_s21 + $0x58] sm:$0xff]  ;;  %v243_v32 = vld [vmem:[%s1167_s21 + $0xc8] sm:$0xff] }
  0x22   : > { %v366_v37 = vsel %vm290_vm1, %v243_v32, 0.0  ;;  %vm665_vm4 = vcmask 261312   ;;  %vm669_vm5 = vcmask 326912   ;;  %vm673_vm6 = vcmask 392512   ;;  %v245_v63 = vld [vmem:[%s1167_s21 + $0xd8] sm:$0xff]  ;;  %v278_v4 = vld [vmem:[%s1167_s21 + $0x1e0] sm:$0xff] }
  0x23   : > { %vm677_vm7 = vcmask 458112   ;;  %v372_v9 = vsel %vm290_vm1, %v245_v63, 0.0  ;;  %vm681_vm8 = vcmask 523712   ;;  %vm685_vm9 = vcmask 589312   ;;  %p1027_p6 = scmp.ne.s32.totalorder %s1110_s12, 3 }
  0x24   : > { %vm689_vm10 = vcmask 654912   ;;  %vm693_vm11 = vcmask 720512   ;;  %vm697_vm12 = vcmask 786112   ;;  %vm701_vm13 = vcmask 851712  }
  0x25   : > { %vm705_vm14 = vcmask 917312   ;;  %vm709_vm15 = vcmask 982912   ;;  %vm713_vm0 = vcmask 1048512  }
  0x26   : > { %391 = vadd.xlane.f32.xlu2 %v390_v16  ;;  %388 = vadd.xlane.f32.xlu1 %v387_v17  ;;  %v228_v16 = vld [vmem:[%s1167_s21 + $0x50] sm:$0xff]  ;;  %v275_v17 = vld [vmem:[%s1167_s21 + $0x1c8] sm:$0xff] }
  0x27   : > { %310 = vadd.xlane.f32.xlu0 %v309_v18  ;;  %v363_v18 = vsel %vm290_vm1, %v242_v15, 0.0  ;;  %v321_v19 = vsel %vm290_vm1, %v228_v16, 0.0  ;;  %v462_v20 = vsel %vm290_vm1, %v275_v17, 0.0  ;;  %v279_v15 = vld [vmem:[%s1167_s21 + $0x1e8] sm:$0xff] }
  0x2e   : > { %436 = vadd.xlane.f32.xlu2 %v435_v22  ;;  %397 = vadd.xlane.f32.xlu1 %v396_v23  ;;  %v276_v22 = vld [vmem:[%s1167_s21 + $0x1d0] sm:$0xff]  ;;  %v262_v23 = vld [vmem:[%s1167_s21 + $0x160] sm:$0xff] }
  0x2f   : > { %394 = vadd.xlane.f32.xlu0 %v393_v24  ;;  %v324_v24 = vsel %vm290_vm1, %v229_v21, 0.0  ;;  %v465_v25 = vsel %vm290_vm1, %v276_v22, 0.0  ;;  %v423_v26 = vsel %vm290_vm1, %v262_v23, 0.0  ;;  %v474_v23 = vsel %vm290_vm1, %v279_v15, 0.0 }
  0x36   : > { %442 = vadd.xlane.f32.xlu2 %v441_v28  ;;  %400 = vadd.xlane.f32.xlu1 %v399_v29  ;;  %v277_v28 = vld [vmem:[%s1167_s21 + $0x1d8] sm:$0xff]  ;;  %v263_v29 = vld [vmem:[%s1167_s21 + $0x168] sm:$0xff] }
  0x37   : > { %439 = vadd.xlane.f32.xlu0 %v438_v30 }
  0x3e   : > { %403 = vadd.xlane.f32.xlu2 %v402_v34  ;;  %343 = vadd.xlane.f32.xlu1 %v342_v35  ;;  %v468_v34 = vsel %vm290_vm1, %v277_v28, 0.0  ;;  %v426_v35 = vsel %vm290_vm1, %v263_v29, 0.0  ;;  %v280_v28 = vld [vmem:[%s1167_s21 + $0x1f0] sm:$0xff] }
  0x3f   : > { %340 = vadd.xlane.f32.xlu0 %v339_v36  ;;  %v1270_v36 = vand.u32 127, %v652_v27  ;;  %v233_v27 = vld [vmem:[%s1167_s21 + $0x78] sm:$0xff] }
  0x41   : > { %v1274_v38 = vadd.s32 4294967272, %v1270_v36  ;;  %v1277_v39 = vadd.s32 4294967288, %v1270_v36  ;;  %v1285_v43 = vadd.s32 4294967264, %v1270_v36  ;;  %v1304_v61 = vadd.s32 4294967248, %v1270_v36 }
  0x46   : > { %406 = vadd.xlane.f32.xlu2 %v405_v40  ;;  %346 = vadd.xlane.f32.xlu1 %v345_v41  ;;  %v264_v40 = vld [vmem:[%s1167_s21 + $0x170] sm:$0xff]  ;;  %v1281_v41 = vadd.s32 4294967280, %v1270_v36 }
  0x47   : > { %445 = vadd.xlane.f32.xlu0 %v444_v42  ;;  %v244_v42 = vld [vmem:[%s1167_s21 + $0xd0] sm:$0xff]  ;;  %v429_v49 = vsel %vm290_vm1, %v264_v40, 0.0  ;;  %v336_v40 = vsel %vm290_vm1, %v233_v27, 0.0 }
  0x4e   : > { %409 = vadd.xlane.f32.xlu2 %v408_v46  ;;  %349 = vadd.xlane.f32.xlu1 %v348_v47  ;;  %v230_v46 = vld [vmem:[%s1167_s21 + $0x60] sm:$0xff]  ;;  %v1289_v47 = vadd.s32 4294967256, %v1270_v36 }
  0x4f   : > { %448 = vadd.xlane.f32.xlu0 %v447_v48  ;;  %v327_v55 = vsel %vm290_vm1, %v230_v46, 0.0 }
  0x56   : > { %412 = vadd.xlane.f32.xlu2 %v411_v52  ;;  %352 = vadd.xlane.f32.xlu1 %v351_v53  ;;  %v369_v53 = vsel %vm290_vm1, %v244_v42, 0.0  ;;  %v477_v42 = vsel %vm290_vm1, %v280_v28, 0.0 }
  0x57   : > { %451 = vadd.xlane.f32.xlu0 %v450_v54 }
  0x5e   : > { %355 = vadd.xlane.f32.xlu2 %v354_v58  ;;  %313 = vadd.xlane.f32.xlu1 %v312_v59 }
  0x5f   : > { %454 = vadd.xlane.f32.xlu0 %v453_v60 }
  0x66   : > { %316 = vadd.xlane.f32.xlu2 %v315_v0  ;;  %457 = vadd.xlane.f32.xlu1 %v456_v1  ;;  %v231_v0 = vld [vmem:[%s1167_s21 + $0x68] sm:$0xff] }
  0x67   : > { %415 = vadd.xlane.f32.xlu0 %v414_v2  ;;  %v330_v10 = vsel %vm290_vm1, %v231_v0, 0.0  ;;  %v283_v0 = vld [vmem:[%s1167_s21 + $0x208] sm:$0xff] }
  0x6e   : > { %460 = vadd.xlane.f32.xlu2 %v459_v6  ;;  %418 = vadd.xlane.f32.xlu1 %v417_v7 }
  0x6f   : > { %358 = vadd.xlane.f32.xlu0 %v357_v8 }
  0x76   : > { %421 = vadd.xlane.f32.xlu2 %v420_v12  ;;  %361 = vadd.xlane.f32.xlu1 %v360_v13  ;;  %v471_v12 = vsel %vm290_vm1, %v278_v4, 0.0  ;;  %v249_v4 = vld [vmem:[%s1167_s21 + $0xf8] sm:$0xff] }
  0x77   : > { %319 = vadd.xlane.f32.xlu0 %v318_v14  ;;  %v232_v14 = vld [vmem:[%s1167_s21 + $0x70] sm:$0xff] }
  0x78   : > { %v333_v22 = vsel %vm290_vm1, %v232_v14, 0.0  ;;  %v384_v14 = vsel %vm290_vm1, %v249_v4, 0.0 }
  0x7e   : > { %364 = vadd.xlane.f32.xlu2 %v363_v18  ;;  %322 = vadd.xlane.f32.xlu1 %v321_v19  ;;  %v265_v18 = vld [vmem:[%s1167_s21 + $0x178] sm:$0xff] }
  0x7f   : > { %463 = vadd.xlane.f32.xlu0 %v462_v20 }
  0x86   : > { %325 = vadd.xlane.f32.xlu2 %v324_v24  ;;  %466 = vadd.xlane.f32.xlu1 %v465_v25  ;;  %v432_v24 = vsel %vm290_vm1, %v265_v18, 0.0  ;;  %v286_v18 = vld [vmem:[%s1167_s21 + $0x220] sm:$0xff] }
  0x87   : > { %424 = vadd.xlane.f32.xlu0 %v423_v26  ;;  %v495_v27 = vsel %vm290_vm1, %v286_v18, 0.0 }
  0x89   : > { %v305_v30 = vpop.xlane.xlu2 %304  ;;  %v299_v31 = vpop.xlane.xlu1 %298 }
  0x8a   : > { %v293_v33 = vpop.xlane.xlu0 %292  ;;  %v660_v54 = vperm.slane %v299_v31, %v1281_v41  ;;  %v668_v57 = vperm.slane %v305_v30, %v1285_v43  ;;  %v246_v31 = vld [vmem:[%s1167_s21 + $0xe0] sm:$0xff] }
  0x8b   : > { %v654_v50 = vperm.slane %v293_v33, %v1270_v36 }
  0x8e   : > { %469 = vadd.xlane.f32.xlu2 %v468_v34  ;;  %427 = vadd.xlane.f32.xlu1 %v426_v35 }
  0x8f   : > { %367 = vadd.xlane.f32.xlu0 %v366_v37 }
  0x91   : > { %v308_v44 = vpop.xlane.xlu2 %307  ;;  %v302_v45 = vpop.xlane.xlu1 %301 }
  0x92   : > { %v296_v48 = vpop.xlane.xlu0 %295  ;;  %v664_v51 = vperm.slane %v302_v45, %v1274_v38  ;;  %v672_v59 = vperm.slane %v308_v44, %v1289_v47  ;;  %v375_v45 = vsel %vm290_vm1, %v246_v31, 0.0 }
  0x93   : > { %v656_v52 = vperm.slane %v296_v48, %v1277_v39 }
  0x95   : > { %v658_v56 = vsel %vm657_vm2, %v656_v52, %v654_v50  ;;  %v248_v50 = vld [vmem:[%s1167_s21 + $0xf0] sm:$0xff] }
  0x96   : > { %v662_v58 = vsel %vm661_vm3, %v660_v54, %v658_v56  ;;  %430 = vadd.xlane.f32.xlu2 %v429_v49  ;;  %370 = vadd.xlane.f32.xlu1 %v369_v53  ;;  %v281_v49 = vld [vmem:[%s1167_s21 + $0x1f8] sm:$0xff]  ;;  %v247_v53 = vld [vmem:[%s1167_s21 + $0xe8] sm:$0xff] }
  0x97   : > { %v666_v60 = vsel %vm665_vm4, %v664_v51, %v662_v58  ;;  %328 = vadd.xlane.f32.xlu0 %v327_v55  ;;  %v480_v58 = vsel %vm290_vm1, %v281_v49, 0.0 }
  0x98   : > { %v670_v62 = vsel %vm669_vm5, %v668_v57, %v666_v60 }
  0x99   : > { %v392_v1 = vpop.xlane.xlu2 %391  ;;  %v389_v2 = vpop.xlane.xlu1 %388  ;;  %v674_v3 = vsel %vm673_vm6, %v672_v59, %v670_v62  ;;  %v381_v59 = vsel %vm290_vm1, %v248_v50, 0.0  ;;  %v378_v62 = vsel %vm290_vm1, %v247_v53, 0.0 }
  0x9a   : > { %v747_v5 = vperm.slane %v392_v1, %v1277_v39  ;;  %v746_v6 = vperm.slane %v389_v2, %v1270_v36  ;;  %v311_v7 = vpop.xlane.xlu0 %310  ;;  %v282_v1 = vld [vmem:[%s1167_s21 + $0x200] sm:$0xff] }
  0x9b   : > { %v676_v8 = vperm.slane %v311_v7, %v1304_v61 }
  0x9c   : > { %v748_v11 = vsel %vm657_vm2, %v747_v5, %v746_v6 }
  0x9d   : > { %v1319_v13 = vsel %vm677_vm7, %v676_v8, %v674_v3 }
  0x9e   : > { %373 = vadd.xlane.f32.xlu2 %v372_v9  ;;  %331 = vadd.xlane.f32.xlu1 %v330_v10  ;;  %v486_v9 = vsel %vm290_vm1, %v283_v0, 0.0  ;;  %v483_v10 = vsel %vm290_vm1, %v282_v1, 0.0 }
  0x9f   : > { %472 = vadd.xlane.f32.xlu0 %v471_v12 }
  0xa1   : > { %v437_v16 = vpop.xlane.xlu2 %436  ;;  %v398_v17 = vpop.xlane.xlu1 %397 }
  0xa2   : > { %v751_v19 = vperm.slane %v398_v17, %v1274_v38  ;;  %v395_v20 = vpop.xlane.xlu0 %394  ;;  %v777_v35 = vperm.slane %v437_v16, %v1270_v36  ;;  %v1368_v16 = vadd.s32 4294967240, %v1270_v36  ;;  %v285_v17 = vld [vmem:[%s1167_s21 + $0x218] sm:$0xff] }
  0xa3   : > { %v749_v21 = vperm.slane %v395_v20, %v1281_v41 }
  0xa5   : > { %v750_v25 = vsel %vm661_vm3, %v749_v21, %v748_v11  ;;  %v284_v21 = vld [vmem:[%s1167_s21 + $0x210] sm:$0xff] }
  0xa6   : > { %334 = vadd.xlane.f32.xlu2 %v333_v22  ;;  %475 = vadd.xlane.f32.xlu1 %v474_v23  ;;  %v752_v26 = vsel %vm665_vm4, %v751_v19, %v750_v25 }
  0xa7   : > { %433 = vadd.xlane.f32.xlu0 %v432_v24 }
  0xa9   : > { %v443_v29 = vpop.xlane.xlu2 %442  ;;  %v401_v30 = vpop.xlane.xlu1 %400 }
  0xaa   : > { %v780_v32 = vperm.slane %v443_v29, %v1281_v41  ;;  %v753_v33 = vperm.slane %v401_v30, %v1285_v43  ;;  %v440_v34 = vpop.xlane.xlu0 %439  ;;  %v489_v30 = vsel %vm290_vm1, %v284_v21, 0.0  ;;  %v522_v21 = vld [vmem:[%s1172_s24 + $0x70] sm:$0xff] }
  0xab   : > { %v778_v37 = vperm.slane %v440_v34, %v1277_v39  ;;  %v289_v34 = vld [vmem:[%s1167_s21 + $0x238] sm:$0xff] }
  0xac   : > { %v754_v44 = vsel %vm669_vm5, %v753_v33, %v752_v26  ;;  %v492_v26 = vsel %vm290_vm1, %v285_v17, 0.0  ;;  %v288_v33 = vld [vmem:[%s1167_s21 + $0x230] sm:$0xff]  ;;  %v504_v49 = vsel %vm290_vm1, %v289_v34, 0.0  ;;  %v552_v17 = vld [vmem:[%s1172_s24 + $0x160] sm:$0xff]  ;;  %v547_v34 = vld [vmem:[%s1172_s24 + $0x138] sm:$0xff] }
  0xad   : > { %v779_v46 = vsel %vm657_vm2, %v778_v37, %v777_v35 }
  0xae   : > { %337 = vadd.xlane.f32.xlu2 %v336_v40  ;;  %478 = vadd.xlane.f32.xlu1 %v477_v42  ;;  %v781_v48 = vsel %vm661_vm3, %v780_v32, %v779_v46  ;;  %v1383_v32 = vadd.s32 4294967232, %v1270_v36  ;;  %v287_v40 = vld [vmem:[%s1167_s21 + $0x228] sm:$0xff] }
  0xaf   : > { %376 = vadd.xlane.f32.xlu0 %v375_v45 }
  0xb1   : > { %v404_v51 = vpop.xlane.xlu2 %403  ;;  %v344_v52 = vpop.xlane.xlu1 %343 }
  0xb2   : > { %v755_v54 = vperm.slane %v404_v51, %v1289_v47  ;;  %v716_v55 = vperm.slane %v344_v52, %v1277_v39  ;;  %v341_v56 = vpop.xlane.xlu0 %340  ;;  %v498_v52 = vsel %vm290_vm1, %v287_v40, 0.0  ;;  %v546_v40 = vld [vmem:[%s1172_s24 + $0x130] sm:$0xff] }
  0xb3   : > { %v715_v57 = vperm.slane %v341_v56, %v1270_v36 }
  0xb4   : > { %v756_v60 = vsel %vm673_vm6, %v755_v54, %v754_v44 }
  0xb5   : > { %v717_v63 = vsel %vm657_vm2, %v716_v55, %v715_v57 }
  0xb6   : > { %481 = vadd.xlane.f32.xlu1 %v480_v58  ;;  %382 = vadd.xlane.f32.xlu2 %v381_v59 }
  0xb7   : > { %379 = vadd.xlane.f32.xlu0 %v378_v62 }
  0xb9   : > { %v407_v2 = vpop.xlane.xlu2 %406  ;;  %v347_v3 = vpop.xlane.xlu1 %346 }
  0xba   : > { %v757_v5 = vperm.slane %v407_v2, %v1304_v61  ;;  %v718_v6 = vperm.slane %v347_v3, %v1281_v41  ;;  %v446_v7 = vpop.xlane.xlu0 %445 }
  0xbb   : > { %v782_v8 = vperm.slane %v446_v7, %v1274_v38  ;;  %v555_v7 = vld [vmem:[%s1172_s24 + $0x178] sm:$0xff] }
  0xbc   : > { %v758_v11 = vsel %vm677_vm7, %v757_v5, %v756_v60  ;;  %v719_v12 = vsel %vm661_vm3, %v718_v6, %v717_v63  ;;  %870 = vmatpush.msra.mxu2 %v555_v7  ;;  %v541_v7 = vld [vmem:[%s1172_s24 + $0x108] sm:$0xff] }
  0xbd   : > { %v783_v15 = vsel %vm665_vm4, %v782_v8, %v781_v48  ;;  %v501_v48 = vsel %vm290_vm1, %v288_v33, 0.0  ;;  %v519_v33 = vld [vmem:[%s1172_s24 + $0x58] sm:$0xff]  ;;  %vm827_vm1 = vcmask 523264  }
  0xbe   : > { %487 = vadd.xlane.f32.xlu2 %v486_v9  ;;  %484 = vadd.xlane.f32.xlu1 %v483_v10 }
  0xbf   : > { %385 = vadd.xlane.f32.xlu0 %v384_v14 }
  0xc1   : > { %v410_v19 = vpop.xlane.xlu2 %409  ;;  %v350_v20 = vpop.xlane.xlu1 %349 }
  0xc2   : > { %v759_v22 = vperm.slane %v410_v19, %v1368_v16  ;;  %v720_v23 = vperm.slane %v350_v20, %v1274_v38  ;;  %v449_v24 = vpop.xlane.xlu0 %448  ;;  %v523_v19 = vld [vmem:[%s1172_s24 + $0x78] sm:$0xff] }
  0xc3   : > { %v784_v25 = vperm.slane %v449_v24, %v1285_v43  ;;  %v551_v20 = vld [vmem:[%s1172_s24 + $0x158] sm:$0xff]  ;;  %830 = vmatpush.msra.mxu0 %v523_v19  ;;  %v510_v19 = vld [vmem:[%s1172_s24 + $0x10] sm:$0xff] }
  0xc4   : > { %v760_v28 = vsel %vm681_vm8, %v759_v22, %v758_v11  ;;  %v721_v29 = vsel %vm665_vm4, %v720_v23, %v719_v12  ;;  %v553_v12 = vld [vmem:[%s1172_s24 + $0x168] sm:$0xff]  ;;  %v550_v22 = vld [vmem:[%s1172_s24 + $0x150] sm:$0xff] }
  0xc5   : > { %v785_v31 = vsel %vm669_vm5, %v784_v25, %v783_v15  ;;  %831 = vmatpush.msra.mxu0 %v522_v21  ;;  %v562_v21 = vld [vmem:[%s1172_s24 + $0x1b0] sm:$0xff] }
  0xc6   : > { %493 = vadd.xlane.f32.xlu1 %v492_v26  ;;  %496 = vadd.xlane.f32.xlu2 %v495_v27  ;;  %v521_v27 = vld [vmem:[%s1172_s24 + $0x68] sm:$0xff] }
  0xc7   : > { %490 = vadd.xlane.f32.xlu0 %v489_v30  ;;  %832 = vmatpush.msra.mxu0 %v521_v27  ;;  %v520_v30 = vld [vmem:[%s1172_s24 + $0x60] sm:$0xff]  ;;  %v509_v27 = vld [vmem:[%s1172_s24 + $0x8] sm:$0xff] }
  0xc9   : > { %v413_v35 = vpop.xlane.xlu2 %412  ;;  %v353_v37 = vpop.xlane.xlu1 %352  ;;  %833 = vmatpush.msra.mxu0 %v520_v30  ;;  %v561_v30 = vld [vmem:[%s1172_s24 + $0x1a8] sm:$0xff] }
  0xca   : > { %v761_v42 = vperm.slane %v413_v35, %v1383_v32  ;;  %v722_v44 = vperm.slane %v353_v37, %v1285_v43  ;;  %v452_v45 = vpop.xlane.xlu0 %451  ;;  %v571_v35 = vld [vmem:[%s1172_s24 + $0x1f8] sm:$0xff]  ;;  %v518_v37 = vld [vmem:[%s1172_s24 + $0x50] sm:$0xff] }
  0xcb   : > { %v786_v46 = vperm.slane %v452_v45, %v1289_v47  ;;  %890 = vmatpush.msra.mxu3 %v571_v35  ;;  %834 = vmatpush.msra.mxu0 %v519_v33  ;;  %v532_v33 = vld [vmem:[%s1172_s24 + $0xc0] sm:$0xff]  ;;  %v531_v35 = vld [vmem:[%s1172_s24 + $0xb8] sm:$0xff] }
  0xcc   : > { %v1394_v50 = vsel %vm685_vm9, %v761_v42, %v760_v28  ;;  %v723_v51 = vsel %vm669_vm5, %v722_v44, %v721_v29  ;;  %v549_v28 = vld [vmem:[%s1172_s24 + $0x148] sm:$0xff]  ;;  %v570_v42 = vld [vmem:[%s1172_s24 + $0x1f0] sm:$0xff] }
  0xcd   : > { %v787_v53 = vsel %vm673_vm6, %v786_v46, %v785_v31  ;;  %v548_v31 = vld [vmem:[%s1172_s24 + $0x140] sm:$0xff]  ;;  %891 = vmatpush.msra.mxu3 %v570_v42  ;;  %835 = vmatpush.msra.mxu0 %v518_v37  ;;  %v559_v37 = vld [vmem:[%s1172_s24 + $0x198] sm:$0xff]  ;;  %v558_v42 = vld [vmem:[%s1172_s24 + $0x190] sm:$0xff] }
  0xce   : > { %502 = vadd.xlane.f32.xlu1 %v501_v48  ;;  %505 = vadd.xlane.f32.xlu2 %v504_v49  ;;  %v517_v48 = vld [vmem:[%s1172_s24 + $0x48] sm:$0xff] }
  0xcf   : > { %499 = vadd.xlane.f32.xlu0 %v498_v52  ;;  %v545_v49 = vld [vmem:[%s1172_s24 + $0x128] sm:$0xff]  ;;  %836 = vmatpush.msra.mxu0 %v517_v48  ;;  %v516_v52 = vld [vmem:[%s1172_s24 + $0x40] sm:$0xff] }
  0xd1   : > { %v356_v54 = vpop.xlane.xlu2 %355  ;;  %v314_v55 = vpop.xlane.xlu1 %313  ;;  %837 = vmatpush.msra.mxu0 %v516_v52  ;;  %v529_v52 = vld [vmem:[%s1172_s24 + $0xa8] sm:$0xff] }
  0xd2   : > { %v724_v56 = vperm.slane %v356_v54, %v1289_v47  ;;  %v680_v57 = vperm.slane %v314_v55, %v1368_v16  ;;  %v455_v58 = vpop.xlane.xlu0 %454  ;;  %v568_v54 = vld [vmem:[%s1172_s24 + $0x1e0] sm:$0xff]  ;;  %v515_v55 = vld [vmem:[%s1172_s24 + $0x38] sm:$0xff] }
  0xd3   : > { %v788_v59 = vperm.slane %v455_v58, %v1304_v61  ;;  %v567_v58 = vld [vmem:[%s1172_s24 + $0x1d8] sm:$0xff]  ;;  %838 = vmatpush.msra.mxu0 %v515_v55  ;;  %v556_v55 = vld [vmem:[%s1172_s24 + $0x180] sm:$0xff] }
  0xd4   : > { %v725_v60 = vsel %vm673_vm6, %v724_v56, %v723_v51  ;;  %v682_v62 = vsel %vm681_vm8, %v680_v57, %v1319_v13  ;;  %v554_v13 = vld [vmem:[%s1172_s24 + $0x170] sm:$0xff]  ;;  %v569_v51 = vld [vmem:[%s1172_s24 + $0x1e8] sm:$0xff]  ;;  %v539_v56 = vld [vmem:[%s1172_s24 + $0xf8] sm:$0xff] }
  0xd5   : > { %v789_v63 = vsel %vm677_vm7, %v788_v59, %v787_v53  ;;  %871 = vmatpush.msra.mxu2 %v554_v13  ;;  %892 = vmatpush.msra.mxu3 %v569_v51  ;;  %v544_v53 = vld [vmem:[%s1172_s24 + $0x120] sm:$0xff]  ;;  %v543_v57 = vld [vmem:[%s1172_s24 + $0x118] sm:$0xff]  ;;  %v514_v59 = vld [vmem:[%s1172_s24 + $0x30] sm:$0xff] }
  0xd6   : > { %850 = vmatpush.msra.mxu1 %v539_v56  ;;  %839 = vmatpush.msra.mxu0 %v514_v59  ;;  %v565_v13 = vld [vmem:[%s1172_s24 + $0x1c8] sm:$0xff]  ;;  %v527_v56 = vld [vmem:[%s1172_s24 + $0x98] sm:$0xff]  ;;  %v1518_v59 = vadd.s32 4294967216, %v1270_v36 }
  0xd7   : > { %872 = vmatpush.msra.mxu2 %v553_v12  ;;  %893 = vmatpush.msra.mxu3 %v568_v54  ;;  %v564_v12 = vld [vmem:[%s1172_s24 + $0x1c0] sm:$0xff] }
  0xd8   : > { %v528_v54 = vld [vmem:[%s1172_s24 + $0xa0] sm:$0xff] }
  0xd9   : > { %v317_v0 = vpop.xlane.xlu2 %316  ;;  %v458_v1 = vpop.xlane.xlu1 %457  ;;  %873 = vmatpush.msra.mxu2 %v552_v17  ;;  %894 = vmatpush.msra.mxu3 %v567_v58  ;;  %v535_v17 = vld [vmem:[%s1172_s24 + $0xd8] sm:$0xff]  ;;  %v1515_v58 = vadd.s32 4294967224, %v1270_v36 }
  0xda   : > { %v684_v2 = vperm.slane %v317_v0, %v1383_v32  ;;  %v790_v3 = vperm.slane %v458_v1, %v1368_v16  ;;  %v1408_v4 = vpop.xlane.xlu0 %415 }
  0xdb   : > { %874 = vmatpush.msra.mxu2 %v551_v20  ;;  %v534_v20 = vld [vmem:[%s1172_s24 + $0xd0] sm:$0xff] }
  0xdc   : > { %v1411_v5 = vsel %vm685_vm9, %v684_v2, %v682_v62  ;;  %v791_v6 = vsel %vm681_vm8, %v790_v3, %v789_v63  ;;  %v542_v62 = vld [vmem:[%s1172_s24 + $0x110] sm:$0xff]  ;;  %v513_v3 = vld [vmem:[%s1172_s24 + $0x28] sm:$0xff] }
  0xdd   : > { %875 = vmatpush.msra.mxu2 %v550_v22  ;;  %v566_v63 = vld [vmem:[%s1172_s24 + $0x1d0] sm:$0xff]  ;;  %840 = vmatpush.msra.mxu0 %v513_v3  ;;  %v1528_v3 = vadd.s32 4294967200, %v1270_v36 }
  0xde   : > { %895 = vmatpush.msra.mxu3 %v566_v63 }
  0xdf   : > { %876 = vmatpush.msra.mxu2 %v549_v28  ;;  %v533_v28 = vld [vmem:[%s1172_s24 + $0xc8] sm:$0xff] }
  0xe0   : > { %896 = vmatpush.msra.mxu3 %v565_v13  ;;  %v763_v13 = vperm.slane %v1408_v4, %v1515_v58 }
  0xe1   : > { %v461_v8 = vpop.xlane.xlu2 %460  ;;  %v1416_v9 = vpop.xlane.xlu1 %418  ;;  %877 = vmatpush.msra.mxu2 %v548_v31  ;;  %v508_v31 = vld [vmem:[%s1172_s24] sm:$0xff] }
  0xe2   : > { %v792_v10 = vperm.slane %v461_v8, %v1383_v32  ;;  %v359_v11 = vpop.xlane.xlu0 %358  ;;  %v512_v8 = vld [vmem:[%s1172_s24 + $0x20] sm:$0xff]  ;;  %897 = vmatpush.msra.mxu3 %v564_v12 }
  0xe3   : > { %v726_v14 = vperm.slane %v359_v11, %v1304_v61  ;;  %878 = vmatpush.msra.mxu2 %v547_v34  ;;  %v540_v11 = vld [vmem:[%s1172_s24 + $0x100] sm:$0xff]  ;;  %841 = vmatpush.msra.mxu0 %v512_v8  ;;  %v1536_v8 = vadd.s32 4294967192, %v1270_v36 }
  0xe4   : > { %v1422_v15 = vsel %vm685_vm9, %v792_v10, %v791_v6  ;;  %v537_v6 = vld [vmem:[%s1172_s24 + $0xe8] sm:$0xff]  ;;  %v536_v10 = vld [vmem:[%s1172_s24 + $0xe0] sm:$0xff] }
  0xe5   : > { %v727_v18 = vsel %vm677_vm7, %v726_v14, %v725_v60  ;;  %879 = vmatpush.msra.mxu2 %v546_v40  ;;  %v538_v60 = vld [vmem:[%s1172_s24 + $0xf0] sm:$0xff]  ;;  %v511_v14 = vld [vmem:[%s1172_s24 + $0x18] sm:$0xff]  ;;  %v560_v34 = vld [vmem:[%s1172_s24 + $0x1a0] sm:$0xff] }
  0xe6   : > { %851 = vmatpush.msra.mxu1 %v538_v60  ;;  %842 = vmatpush.msra.mxu0 %v511_v14  ;;  %v530_v40 = vld [vmem:[%s1172_s24 + $0xb0] sm:$0xff]  ;;  %v1521_v60 = vadd.s32 4294967208, %v1270_v36  ;;  %v524_v12 = vld [vmem:[%s1172_s24 + $0x80] sm:$0xff] }
  0xe7   : > { %880 = vmatpush.msra.mxu2 %v545_v49 }
  0xe8   : > { %852 = vmatpush.msra.mxu1 %v537_v6  ;;  %843 = vmatpush.msra.mxu0 %v510_v19  ;;  %v1554_v19 = vadd.s32 4294967176, %v1270_v36 }
  0xe9   : > { %v1430_v23 = vpop.xlane.xlu2 %421  ;;  %v362_v24 = vpop.xlane.xlu1 %361  ;;  %881 = vmatpush.msra.mxu2 %v544_v53  ;;  %v557_v53 = vld [vmem:[%s1172_s24 + $0x188] sm:$0xff] }
  0xea   : > { %v728_v25 = vperm.slane %v362_v24, %v1368_v16  ;;  %v1433_v26 = vpop.xlane.xlu0 %319  ;;  %853 = vmatpush.msra.mxu1 %v536_v10  ;;  %844 = vmatpush.msra.mxu0 %v509_v27  ;;  %v765_v10 = vperm.slane %v1416_v9, %v1518_v59  ;;  %v767_v14 = vperm.slane %v1430_v23, %v1521_v60 }
  0xeb   : > { %882 = vmatpush.msra.mxu2 %v543_v57  ;;  %v526_v57 = vld [vmem:[%s1172_s24 + $0x90] sm:$0xff] }
  0xec   : > { %v1438_v29 = vsel %vm681_vm8, %v728_v25, %v727_v18  ;;  %v563_v18 = vld [vmem:[%s1172_s24 + $0x1b8] sm:$0xff]  ;;  %854 = vmatpush.msra.mxu1 %v535_v17  ;;  %845 = vmatpush.msra.mxu0 %v508_v31 }
  0xed   : > { %883 = vmatpush.msra.mxu2 %v542_v62  ;;  %898 = vmatpush.msra.mxu3 %v563_v18  ;;  %v579_v17 = vld [vmem:[%s1172_s24 + $0x238] sm:$0xff]  ;;  %v764_v18 = vsel %vm689_vm10, %v763_v13, %v1394_v50  ;;  %v688_v50 = vperm.slane %v1433_v26, %v1515_v58 }
  0xee   : > { %855 = vmatpush.msra.mxu1 %v534_v20  ;;  %918 = vmatpush.msrb.mxu0 %v579_v17  ;;  %v766_v23 = vsel %vm693_vm11, %v765_v10, %v764_v18  ;;  %v574_v10 = vld [vmem:[%s1172_s24 + $0x210] sm:$0xff]  ;;  %v573_v18 = vld [vmem:[%s1172_s24 + $0x208] sm:$0xff] }
  0xef   : > { %884 = vmatpush.msra.mxu2 %v541_v7  ;;  %899 = vmatpush.msra.mxu3 %v562_v21  ;;  %v525_v7 = vld [vmem:[%s1172_s24 + $0x88] sm:$0xff] }
  0xf0   : > { %856 = vmatpush.msra.mxu1 %v533_v28 }
  0xf1   : > { %v1448_v44 = vpop.xlane.xlu2 %364  ;;  %v1450_v45 = vpop.xlane.xlu1 %322  ;;  %885 = vmatpush.msra.mxu2 %v540_v11  ;;  %900 = vmatpush.msra.mxu3 %v561_v30  ;;  %v1541_v11 = vadd.s32 4294967184, %v1270_v36  ;;  %v578_v30 = vld [vmem:[%s1172_s24 + $0x230] sm:$0xff] }
  0xf2   : > { %v1452_v46 = vpop.xlane.xlu0 %463  ;;  %857 = vmatpush.msra.mxu1 %v532_v33  ;;  %v692_v31 = vperm.slane %v1450_v45, %v1518_v59  ;;  %919 = vmatpush.msrb.mxu0 %v578_v30  ;;  %v690_v45 = vsel %vm689_vm10, %v688_v50, %v1411_v5 }
  0xf3   : > { %901 = vmatpush.msra.mxu3 %v560_v34  ;;  %v794_v5 = vperm.slane %v1452_v46, %v1515_v58 }
  0xf4   : > { %858 = vmatpush.msra.mxu1 %v531_v35 }
  0xf5   : > { %902 = vmatpush.msra.mxu3 %v559_v37  ;;  %v577_v37 = vld [vmem:[%s1172_s24 + $0x228] sm:$0xff] }
  0xf6   : > { %859 = vmatpush.msra.mxu1 %v530_v40  ;;  %920 = vmatpush.msrb.mxu0 %v577_v37 }
  0xf7   : > { %903 = vmatpush.msra.mxu3 %v558_v42 }
  0xf8   : > { %860 = vmatpush.msra.mxu1 %v529_v52  ;;  %v576_v52 = vld [vmem:[%s1172_s24 + $0x220] sm:$0xff] }
  0xf9   : > { %v1468_v0 = vpop.xlane.xlu2 %325  ;;  %v1470_v1 = vpop.xlane.xlu1 %466  ;;  %904 = vmatpush.msra.mxu3 %v557_v53  ;;  %921 = vmatpush.msrb.mxu0 %v576_v52 }
  0xfa   : > { %v1472_v2 = vpop.xlane.xlu0 %424  ;;  %861 = vmatpush.msra.mxu1 %v528_v54  ;;  %v696_v35 = vperm.slane %v1468_v0, %v1521_v60  ;;  %v694_v0 = vsel %vm693_vm11, %v692_v31, %v690_v45  ;;  %v575_v54 = vld [vmem:[%s1172_s24 + $0x218] sm:$0xff] }
  0xfb   : > { %905 = vmatpush.msra.mxu3 %v556_v55  ;;  %v769_v4 = vperm.slane %v1472_v2, %v1528_v3  ;;  %v768_v2 = vsel %vm697_vm12, %v767_v14, %v766_v23  ;;  %922 = vmatpush.msrb.mxu0 %v575_v54 }
  0xfc   : > { %862 = vmatpush.msra.mxu1 %v527_v56 }
  0xfd   : > { %923 = vmatpush.msrb.mxu0 %v574_v10 }
  0xfe   : > { %863 = vmatpush.msra.mxu1 %v526_v57 }
  0xff   : > { %924 = vmatpush.msrb.mxu0 %v573_v18 }
 0x100   : > { %864 = vmatpush.msra.mxu1 %v525_v7 }
 0x101   : > { %v1488_v22 = vpop.xlane.xlu2 %469  ;;  %v1490_v24 = vpop.xlane.xlu1 %427 }
 0x102   : > { %v1492_v25 = vpop.xlane.xlu0 %367  ;;  %865 = vmatpush.msra.mxu1 %v524_v12  ;;  %v771_v9 = vperm.slane %v1490_v24, %v1536_v8  ;;  %v770_v24 = vsel %vm701_vm13, %v769_v4, %v768_v2  ;;  %v796_v12 = vperm.slane %v1470_v1, %v1518_v59  ;;  %v798_v4 = vperm.slane %v1488_v22, %v1521_v60  ;;  %v572_v1 = vld [vmem:[%s1172_s24 + $0x200] sm:$0xff] }
 0x103   : > { %v730_v22 = vperm.slane %v1448_v44, %v1383_v32  ;;  %925 = vmatpush.msrb.mxu0 %v572_v1 }
 0x104   : > { %v772_v34 = vsel %vm705_vm14, %v771_v9, %v770_v24  ;;  %v795_v9 = vsel %vm689_vm10, %v794_v5, %v1422_v15 }
 0x109   : > { %v431_v48 = vpop.xlane.xlu2 %430  ;;  %v1504_v49 = vpop.xlane.xlu1 %370 }
 0x10a   : > { %v1506_v51 = vpop.xlane.xlu0 %328  ;;  %v773_v20 = vperm.slane %v431_v48, %v1541_v11 }
 0x10b   : > { %v700_v40 = vperm.slane %v1506_v51, %v1528_v3  ;;  %v698_v51 = vsel %vm697_vm12, %v696_v35, %v694_v0 }
 0x10c   : > { %v774_v26 = vsel %vm709_vm15, %v773_v20, %v772_v34  ;;  %v797_v20 = vsel %vm693_vm11, %v796_v12, %v795_v9 }
 0x10d   : > { %v702_v55 = vsel %vm701_vm13, %v700_v40, %v698_v51 }
 0x111   : > { %v1523_v62 = vpop.xlane.xlu2 %373  ;;  %v1525_v63 = vpop.xlane.xlu1 %331 }
 0x112   : > { %v1530_v6 = vpop.xlane.xlu0 %472  ;;  %v704_v48 = vperm.slane %v1525_v63, %v1536_v8  ;;  %v736_v32 = vperm.slane %v1523_v62, %v1521_v60 }
 0x113   : > { %v800_v46 = vperm.slane %v1530_v6, %v1528_v3  ;;  %v732_v6 = vperm.slane %v1492_v25, %v1515_v58  ;;  %v731_v25 = vsel %vm685_vm9, %v730_v22, %v1438_v29 }
 0x114   : > { %v706_v13 = vsel %vm705_vm14, %v704_v48, %v702_v55 }
 0x115   : > { %v733_v34 = vsel %vm689_vm10, %v732_v6, %v731_v25 }
 0x119   : > { %v335_v21 = vpop.xlane.xlu2 %334  ;;  %v476_v27 = vpop.xlane.xlu1 %475 }
 0x11a   : > { %v434_v28 = vpop.xlane.xlu0 %433  ;;  %v708_v53 = vperm.slane %v335_v21, %v1541_v11  ;;  %v802_v23 = vperm.slane %v476_v27, %v1536_v8  ;;  %v799_v21 = vsel %vm697_vm12, %v798_v4, %v797_v20  ;;  %v734_v27 = vperm.slane %v1504_v49, %v1518_v59 }
 0x11b   : > { %v775_v33 = vperm.slane %v434_v28, %v1554_v19  ;;  %v801_v50 = vsel %vm701_vm13, %v800_v46, %v799_v21 }
 0x11c   : > { %v710_v14 = vsel %vm709_vm15, %v708_v53, %v706_v13  ;;  %v803_v31 = vsel %vm705_vm14, %v802_v23, %v801_v50  ;;  %v735_v59 = vsel %vm693_vm11, %v734_v27, %v733_v34 }
 0x11d   : > { %v776_v42 = vsel %vm713_vm0, %v775_v33, %v774_v26  ;;  %v737_v35 = vsel %vm697_vm12, %v736_v32, %v735_v59 }
 0x11e   : > { %886 = vmatmul.f32.vlgmr.msra.gmra.mxu2 %v776_v42 }
 0x121   : > { %v338_v56 = vpop.xlane.xlu2 %337  ;;  %v479_v57 = vpop.xlane.xlu1 %478 }
 0x122   : > { %v712_v63 = vperm.slane %v338_v56, %v1554_v19  ;;  %v377_v7 = vpop.xlane.xlu0 %376  ;;  %v804_v2 = vperm.slane %v479_v57, %v1541_v11 }
 0x123   : > { %v738_v58 = vperm.slane %v377_v7, %v1528_v3 }
 0x124   : > { %v714_v17 = vsel %vm713_vm0, %v712_v63, %v710_v14  ;;  %v805_v44 = vsel %vm709_vm15, %v804_v2, %v803_v31 }
 0x125   : > { %846 = vmatmul.f32.vlgmr.msra.gmra.mxu0 %v714_v17  ;;  %v739_v60 = vsel %vm701_vm13, %v738_v58, %v737_v35 }
 0x129   : > { %v482_v15 = vpop.xlane.xlu1 %481  ;;  %v383_v24 = vpop.xlane.xlu2 %382 }
 0x12a   : > { %v806_v28 = vperm.slane %v482_v15, %v1554_v19  ;;  %v380_v30 = vpop.xlane.xlu0 %379  ;;  %v742_v62 = vperm.slane %v383_v24, %v1541_v11 }
 0x12b   : > { %v740_v49 = vperm.slane %v380_v30, %v1536_v8 }
 0x12c   : > { %v807_v33 = vsel %vm713_vm0, %v806_v28, %v805_v44 }
 0x12d   : > { %906 = vmatmul.f32.vlgmr.msra.gmra.mxu3 %v807_v33  ;;  %v741_v29 = vsel %vm705_vm14, %v740_v49, %v739_v60 }
 0x12e   : > { %v743_v42 = vsel %vm709_vm15, %v742_v62, %v741_v29 }
 0x131   : > { %v488_v26 = vpop.xlane.xlu2 %487  ;;  %v485_v37 = vpop.xlane.xlu1 %484 }
 0x132   : > { %v386_v3 = vpop.xlane.xlu0 %385  ;;  %v809_v45 = vperm.slane %v488_v26, %v1277_v39  ;;  %v808_v48 = vperm.slane %v485_v37, %v1270_v36 }
 0x133   : > { %v744_v40 = vperm.slane %v386_v3, %v1554_v19 }
 0x134   : > { %v810_v54 = vsel %vm657_vm2, %v809_v45, %v808_v48  ;;  %vm931_vm2 = vcmask 778240  }
 0x135   : > { %v745_v8 = vsel %vm713_vm0, %v744_v40, %v743_v42 }
 0x136   : > { %866 = vmatmul.f32.vlgmr.msra.gmra.mxu1 %v745_v8 }
 0x139   : > { %v494_v52 = vpop.xlane.xlu1 %493  ;;  %v497_v0 = vpop.xlane.xlu2 %496 }
 0x13a   : > { %v491_v53 = vpop.xlane.xlu0 %490  ;;  %v813_v51 = vperm.slane %v494_v52, %v1274_v38  ;;  %v815_v55 = vperm.slane %v497_v0, %v1285_v43 }
 0x13b   : > { %v811_v11 = vperm.slane %v491_v53, %v1281_v41 }
 0x13d   : > { %v812_v19 = vsel %vm661_vm3, %v811_v11, %v810_v54 }
 0x13e   : > { %v814_v56 = vsel %vm665_vm4, %v813_v51, %v812_v19 }
 0x13f   : > { %v816_v41 = vsel %vm669_vm5, %v815_v55, %v814_v56 }
 0x141   : > { %v503_v57 = vpop.xlane.xlu1 %502  ;;  %v506_v5 = vpop.xlane.xlu2 %505 }
 0x142   : > { %v500_v39 = vpop.xlane.xlu0 %499  ;;  %v819_v36 = vperm.slane %v503_v57, %v1304_v61  ;;  %v821_v7 = vperm.slane %v506_v5, %v1368_v16 }
 0x143   : > { %v817_v63 = vperm.slane %v500_v39, %v1289_v47  ;;  %v507_v47 = vld [vmem:[#allocation2] sm:$0x1] }
 0x145   : > { %v818_v13 = vsel %vm673_vm6, %v817_v63, %v816_v41 }
 0x146   : > { %v820_v38 = vsel %vm677_vm7, %v819_v36, %v818_v13 }
 0x147   : > { %v822_v43 = vsel %vm681_vm8, %v821_v7, %v820_v38 }
 0x148   : > { %1026 = vmatmul.msk.f32.vlgmr.msrb.gmra.mxu0 %vm827_vm1, %v822_v43 }
 0x1a1   : > { %v887_v4 = vpop.f32.mrf.mxu2 }
 0x1a2   : > { %v847_v12 = vpop.f32.mrf.mxu0 }
 0x1b0   : > { %v907_v61 = vpop.f32.mrf.mxu3 }
 0x1b3   : > { %v867_v10 = vpop.f32.mrf.mxu1 }
 0x1b4   : > { %v868_v14 = vadd.f32 %v867_v10, %v847_v12 }
 0x1b6   : > { %v888_v17 = vadd.f32 %v887_v4, %v868_v14 }
 0x1b8   : > { %v908_v18 = vadd.f32 %v907_v61, %v888_v17 }
 0x1c5   : > { %v927_v46 = vpop.f32.mrf.mxu0 }
 0x1c6   : > { %v928_v16 = vadd.f32 %v927_v46, %v908_v18  ;;  %936 = sbr.rel (%p1027_p6) target bundleno = 471 (0x1d7), region = 40 }
 0x1c8   : > { %v930_v9 = vadd.f32 %v928_v16, %v507_v47 }
 0x1ca   : > { %932 = vst.msk [vmem:[#allocation2] sm:$0x1] %vm931_vm2, %v930_v9 }
 0x1cb   : > { %v939_v1 = vld [vmem:[%s1666_s2] sm:$0x1] }
 0x1d1   : > { %v937_v23 = vld [vmem:[#allocation2] sm:$0x1] }
 0x1d2   : > { %v938_v20 = vmul.f32 0.020408163, %v937_v23 }
 0x1d4   : > { %v940_v2 = vadd.f32 %v939_v1, %v938_v20 }
 0x1d6   : > { %941 = vst.msk [vmem:[#allocation3] sm:$0x1] %vm931_vm2, %v940_v2 }
 0x1d7 PF: > { %p1036_p7 = scmp.eq.s32.totalorder %s1019_s15, 3  ;;  %s951_s29 = sshll.u32 %s1667_s3, 4  ;;  %s952_s29 = int_to_ptr.hbm [resolvable:$true] %s951_s29 }
 0x1d8   : > { %s1121_s30 = smov [#allocation3]  }
 0x1d9   : > { %s949_s4 = sshll.u32 %s1121_s30, 4  ;;  %s950_s4 = int_to_ptr.vmem [resolvable:$true] %s949_s4 }
 0x1da   : > { %1033 = dma.vmem_to_hbm [thread:$0]  (%p1036_p7), %s950_s4, 16, %s952_s29, [#allocation4]  }
 0x1db   : > { %1105 = dma.done.wait (%p1036_p7), [#allocation4], 16  }
 0x1dc   : > { %1107 = vsyncadd (%p1036_p7), [#allocation4], 4294967280 }
 0x1dd PF: > { %s14_s14 = sadd.s32 1, %s1118_s14   ;;  %s1668_s12 = smov %s1114_s13 }
 0x1de   : > { %p11_p8 = scmp.ge.s32.totalorder %s14_s14, 6   ;;  %s1669_s13 = smov %s1671_s16 }
 0x1e0   :  { %13 = sbr.rel (!%p11_p8) target bundleno = 2 (0x2), region = 71 }
 0x1e5   :  { %965 = vsyncpa [#allocation4], 1 }
 0x1e6   :  { %967 = vsyncpa [#allocation4 + $0x1], 1 }

</bundles_post_ra>
